<compile_context>
chip_gen: v6e
topology: v6e:2x2x1
jax: 0.10.0
libtpu: 0.0.40
codegen_flags: <defaults>
</compile_context>

<pallas_src>
import functools
import math

import jax
import jax.numpy as jnp
from jax.experimental import pallas as pl
from jax.experimental.pallas import tpu as pltpu


def _round_up(n: int, m: int) -> int:
    return ((n + m - 1) // m) * m


def _cdiv(a: int, b: int) -> int:
    return -(-a // b)


@functools.lru_cache(maxsize=1)
def _vmem_capacity_bytes() -> int:
    """Per-TensorCore VMEM capacity; conservative fallback if query fails."""
    try:
        return int(getattr(pltpu.get_tpu_info(), "vmem_capacity_bytes", 64 << 20))
    except Exception:
        return 64 << 20  # v7x per-TC VMEM; safe lower bound for v5e/v6e too


def _vmem_budget_bytes() -> int:
    # Leave headroom for semaphores / compiler-internal scratch.
    return int(_vmem_capacity_bytes() * 0.45)


def _weight_resident(out_features: int, i_cols: int, w_bytes: int) -> bool:
    return out_features * i_cols * w_bytes <= _vmem_budget_bytes() // 3


def _pinv_linear_kernel(x_ref, w_ref, c_ref, o_ref):
    # x_ref: (TM, O)  w_ref: (O, TN)  c_ref: (1, TN)  o_ref: (TM, TN)
    x = x_ref[...].astype(w_ref.dtype)  # bf16 feeds the MXU directly (f32 no-op)
    acc = jnp.dot(x, w_ref[...], preferred_element_type=jnp.float32)
    o_ref[...] = (acc - c_ref[...]).astype(o_ref.dtype)


def make_pinv_linear_params(weight, bias, *, weight_dtype=jnp.bfloat16):
    """One-time parameter setup (SVD) — keep OUT of the per-step hot path.

    weight: (out_features, in_features) = ref_linear.weight
    bias:   (out_features,) or None     = ref_linear.bias
    Returns (w_pinv_t, c_row, in_features):
      w_pinv_t: (O, I') in weight_dtype; I' = I (resident path) or I padded to 128
      c_row:    (1, I') f32 folded bias (zeros if bias is None)
    """
    out_features, in_features = weight.shape
    # TODO(synk): for ill-conditioned W a float64 host-side pinv would be more
    # accurate; TPU-side jnp gives f32 only.
    w_pinv_t = jnp.linalg.pinv(weight.astype(jnp.float32)).T  # (O, I)

    w_bytes = jnp.dtype(weight_dtype).itemsize
    if (not _weight_resident(out_features, in_features, w_bytes)
            and in_features % 128 != 0):
        # Column-streamed path wants 128-aligned column tiles.
        pad = _round_up(in_features, 128) - in_features
        w_pinv_t = jnp.pad(w_pinv_t, ((0, 0), (0, pad)))

    if bias is None:
        c_row = jnp.zeros((1, w_pinv_t.shape[1]), jnp.float32)
    else:
        c_row = bias.astype(jnp.float32).reshape(1, out_features) @ w_pinv_t

    return w_pinv_t.astype(weight_dtype), c_row, in_features


@functools.partial(jax.jit, static_argnames=("in_features", "use_xla_for_tiny"))
def pinv_linear_forward(x, w_pinv_t, c_row, *, in_features, use_xla_for_tiny=False):
    """Hot path: y = x @ Wt - c  (== (x - b) @ pinv(W).T), Pallas-tiled."""
    out_features, i_cols = w_pinv_t.shape
    assert x.shape[-1] == out_features
    lead = x.shape[:-1]
    n_rows = math.prod(lead) if lead else 1
    x2d = x.reshape(n_rows, out_features)
    out_dtype = x.dtype

    # Tiny-problem escape hatch: with O < 128 and few rows the fixed per-step /
    # pallas_call overhead dominates and XLA's fused dot matches or beats it.
    if use_xla_for_tiny and out_features < 128 and n_rows <= 256:
        y = jnp.dot(x2d.astype(w_pinv_t.dtype), w_pinv_t,
                    preferred_element_type=jnp.float32) - c_row
        return y[:, :in_features].astype(out_dtype).reshape(*lead, in_features)

    x_bytes = jnp.dtype(x2d.dtype).itemsize
    w_bytes = jnp.dtype(w_pinv_t.dtype).itemsize
    out_bytes = jnp.dtype(out_dtype).itemsize
    budget = _vmem_budget_bytes()
    sub = max(8, 32 // x_bytes)  # sublane multiple: f32 -> 8, bf16 -> 16

    resident = _weight_resident(out_features, i_cols, w_bytes)
    if resident:
        tn = i_cols                                   # single column block, exact width
        w_vmem = out_features * i_cols * w_bytes      # single-buffered, whole in VMEM
        c_vmem = i_cols * 4
    else:
        tn = ((budget // 3) // (2 * out_features * w_bytes)) // 128 * 128
        tn = max(128, min(_round_up(i_cols, 128), tn))
        # TODO(synk): if out_features is so large that even an (O, 128) weight block
        # overflows VMEM, add an "arbitrary" K reduction axis over O with an f32
        # accumulator scratch (pl.when init/finalize pattern).
        w_vmem = 2 * out_features * tn * w_bytes      # double-buffered column stream
        c_vmem = 2 * tn * 4

    # Row tile from the remaining VMEM budget (x + out tiles are double-buffered).
    per_row = 2 * (out_features * x_bytes + tn * out_bytes)
    tm_cap = max(budget - w_vmem - c_vmem, 0) // per_row // sub * sub
    tm_cap = max(sub, min(512, tm_cap))

    # Balance row blocks so >=2 blocks exist when possible (both v7x TCs busy,
    # ragged tails roughly even); the extra grid step is negligible on v5e/v6e.
    n_row_blocks = _cdiv(n_rows, tm_cap)
    if n_rows >= 2 * sub:
        n_row_blocks = max(n_row_blocks, 2)
    tm = min(tm_cap, _round_up(_cdiv(n_rows, n_row_blocks), sub))

    vmem_est = (2 * tm * out_features * x_bytes + w_vmem + c_vmem
                + 2 * tm * tn * out_bytes)
    vmem_limit = int(min(_vmem_capacity_bytes(),
                         max(vmem_est + (8 << 20), 32 << 20)))

    if resident:
        grid = (_cdiv(n_rows, tm),)
        in_specs = [
            pl.BlockSpec((tm, out_features), lambda i: (i, 0)),            # x tile
            pl.BlockSpec(memory_space=pltpu.MemorySpace.VMEM),             # Wt whole, 1 buffer
            pl.BlockSpec(memory_space=pltpu.MemorySpace.VMEM),             # folded bias, 1 buffer
        ]
        out_specs = pl.BlockSpec((tm, i_cols), lambda i: (i, 0))
        dim_sems = ("parallel",)
    else:
        grid = (_cdiv(n_rows, tm), _cdiv(i_cols, tn))   # cols innermost: x tile reused
        in_specs = [
            pl.BlockSpec((tm, out_features), lambda i, j: (i, 0)),
            pl.BlockSpec((out_features, tn), lambda i, j: (0, j)),
            pl.BlockSpec((1, tn), lambda i, j: (0, j)),
        ]
        out_specs = pl.BlockSpec((tm, tn), lambda i, j: (i, j))
        dim_sems = ("parallel", "parallel")

    out2d = pl.pallas_call(
        _pinv_linear_kernel,
        out_shape=jax.ShapeDtypeStruct((n_rows, i_cols), out_dtype),
        grid=grid,
        in_specs=in_specs,
        out_specs=out_specs,
        compiler_params=pltpu.CompilerParams(
            dimension_semantics=dim_sems,
            vmem_limit_bytes=vmem_limit,
        ),
    )(x2d, w_pinv_t, c_row)

    if i_cols != in_features:
        # Only the column-streamed path can carry lane padding; trim it here.
        out2d = out2d[:, :in_features]
    return out2d.reshape(*lead, in_features)


def pinv_linear(x, weight, bias, *, weight_dtype=jnp.bfloat16):
    """Convenience one-shot wrapper (setup + forward). Prefer calling
    make_pinv_linear_params once and pinv_linear_forward per step."""
    w_pinv_t, c_row, in_features = make_pinv_linear_params(
        weight, bias, weight_dtype=weight_dtype)
    return pinv_linear_forward(x, w_pinv_t, c_row, in_features=in_features)


if __name__ == "__main__":
    key = jax.random.PRNGKey(0)
    k_w, k_b, k_x = jax.random.split(key, 3)

    in_features = 32
    out_features = 16
    batch, seq = 2, 8

    # Deterministic synthetic "ref_linear" parameters.
    weight = jax.random.normal(k_w, (out_features, in_features), jnp.float32) * 0.1
    bias = jax.random.normal(k_b, (out_features,), jnp.float32) * 0.1

    # Input lives in ref_linear's OUTPUT space: (..., out_features).
    x = jax.random.normal(k_x, (batch, seq, out_features), jnp.float32)

    # Plain-JAX f32 reference of the module's forward.
    y_ref = (x - bias) @ jnp.linalg.pinv(weight).T

    # 1) f32 weights: faithful to the module, tight tolerance.
    w32, c32, nfeat = make_pinv_linear_params(weight, bias, weight_dtype=jnp.float32)
    y32 = jax.block_until_ready(pinv_linear_forward(x, w32, c32, in_features=nfeat))
    assert y32.shape == (batch, seq, in_features)
    assert jnp.allclose(y32, y_ref, atol=1e-4, rtol=1e-4)

    # 2) bf16 weights (default perf config, MXU-native): looser tolerance.
    wbf, cbf, nfeat = make_pinv_linear_params(weight, bias)
    ybf = jax.block_until_ready(pinv_linear_forward(x, wbf, cbf, in_features=nfeat))
    assert ybf.shape == (batch, seq, in_features)
    assert jnp.allclose(ybf, y_ref, atol=5e-2, rtol=5e-2)

    print("KERNEL_OK")
</pallas_src>

<mosaic_0001>
module attributes {stable_mosaic.version = 11 : i64} {
  func.func @_pinv_linear_kernel(%arg0: i32, %arg1: memref<8x16xf32, #tpu.memory_space<vmem>>, %arg2: memref<16x32xf32, #tpu.memory_space<vmem>>, %arg3: memref<1x32xf32, #tpu.memory_space<vmem>>, %arg4: memref<8x32xf32, #tpu.memory_space<vmem>>) attributes {dimension_semantics = [#tpu.dimension_semantics<parallel>], iteration_bounds = array<i64: 2>, scalar_prefetch = 0 : i64, scratch_operands = 0 : i64, tpu.core_type = #tpu.core_type<tc>, window_params = [{transform_indices = @transform_0, window_bounds = array<i64: 8, 16>}, {pipeline_mode = #tpu.pipeline_mode<synchronous>, transform_indices = @transform_1, window_bounds = array<i64: 16, 32>}, {pipeline_mode = #tpu.pipeline_mode<synchronous>, transform_indices = @transform_2, window_bounds = array<i64: 1, 32>}, {transform_indices = @transform_3, window_bounds = array<i64: 8, 32>}]} {
    %c0 = arith.constant 0 : index
    %c0_0 = arith.constant 0 : index
    %0 = vector.load %arg1[%c0, %c0_0] : memref<8x16xf32, #tpu.memory_space<vmem>>, vector<8x16xf32>
    %c0_1 = arith.constant 0 : index
    %c0_2 = arith.constant 0 : index
    %1 = vector.load %arg2[%c0_1, %c0_2] : memref<16x32xf32, #tpu.memory_space<vmem>>, vector<16x32xf32>
    %cst = arith.constant dense<0.000000e+00> : vector<8x32xf32>
    %2 = tpu.matmul %0, %1, %cst {dimension_numbers = #tpu.dot_dimension_numbers<[1], [0], [0], [1], [0, 0, 1, 1], [], []>} : vector<8x16xf32>, vector<16x32xf32>, vector<8x32xf32> -> vector<8x32xf32>
    %c0_3 = arith.constant 0 : index
    %c0_4 = arith.constant 0 : index
    %3 = vector.load %arg3[%c0_3, %c0_4] : memref<1x32xf32, #tpu.memory_space<vmem>>, vector<1x32xf32>
    %4 = vector.broadcast %3 : vector<1x32xf32> to vector<8x32xf32>
    %5 = arith.subf %2, %4 : vector<8x32xf32>
    %c0_5 = arith.constant 0 : index
    %c0_6 = arith.constant 0 : index
    %6 = vector.load %arg4[%c0_5, %c0_6] : memref<8x32xf32, #tpu.memory_space<vmem>>, vector<8x32xf32>
    tpu.vector_store %arg4[%c0_5, %c0_6], %5 {strides = array<i32>} : memref<8x32xf32, #tpu.memory_space<vmem>>, vector<8x32xf32>,
    return
  }
  func.func @transform_0(%arg0: i32) -> (i32, i32) {
    %c0_i32 = arith.constant 0 : i32
    %c0_i32_0 = arith.constant 0 : i32
    return %arg0, %c0_i32 : i32, i32
  }
  func.func @transform_1(%arg0: i32) -> (i32, i32) {
    %c0_i32 = arith.constant 0 : i32
    %c0_i32_0 = arith.constant 0 : i32
    %c0_i32_1 = arith.constant 0 : i32
    return %c0_i32, %c0_i32_0 : i32, i32
  }
  func.func @transform_2(%arg0: i32) -> (i32, i32) {
    %c0_i32 = arith.constant 0 : i32
    %c0_i32_0 = arith.constant 0 : i32
    %c0_i32_1 = arith.constant 0 : i32
    return %c0_i32, %c0_i32_0 : i32, i32
  }
  func.func @transform_3(%arg0: i32) -> (i32, i32) {
    %c0_i32 = arith.constant 0 : i32
    %c0_i32_0 = arith.constant 0 : i32
    return %arg0, %c0_i32 : i32, i32
  }
}

</mosaic_0001>

<bundles_post_ra>
// kernel: pinv_linear_forward.1
= control target key start
LH: loop header
LB: loop body
LE: loop exit
PB: predicated region body
PF: predicated region fallthrough
CT: control target
= control target key end

     0   :  { %8 = vsyncpa [#allocation3], 0  ;;  %s783_s0 = inlined_call_operand.hbm [shape: f32[16,16], index: 0, kind: input, shape index: {}]   ;;  %s784_s1 = inlined_call_operand.hbm [shape: f32[16,32], index: 1, kind: input, shape index: {}]   ;;  %s785_s2 = inlined_call_operand.vmem [shape: f32[1,32], index: 2, kind: input, shape index: {}]   ;;  %s786_s3 = inlined_call_operand.hbm [shape: f32[16,32], index: 3, kind: output, shape index: {}]  }
   0x1   :  { %10 = vsyncpa [#allocation3 + $0x1], 0 }
   0x2   :  { %11 = vsyncpa [#allocation6], 0 }
   0x3   :  { %12 = vsyncpa [#allocation4], 0 }
   0x4   :  { %14 = vsyncpa [#allocation4 + $0x1], 0  ;;  %s620_s12 = smov 0   ;;  %s622_s13 = smov 0  }
   0x5   :  { %s624_s14 = smov 0   ;;  %s626_s15 = smov 0  }
   0x6 LB: > { %s641_s16 = sadd.s32 4294967295, %s591_s15   ;;  %s382_s17 = sadd.s32 4294967294, %s591_s15   ;;  %s591_s15 = sphi %s626_s15, %s808_s15   ;;  %s587_s14 = sphi %s624_s14, %s807_s14   ;;  %s583_s13 = sphi %s622_s13, %s806_s13   ;;  %s579_s12 = sphi %s620_s12, %s805_s12  }
   0x7   : > { %p40_p0 = scmp.ne.s32.totalorder %s583_s13, %s579_s12  ;;  %p787_p1 = scmp.eq.s32.totalorder %s641_s16, 0 }
   0x8   : > { %p112_p3 = scmp.eq.s32.totalorder %s382_s17, 1  ;;  %p383_p5 = scmp.ge.s32.totalorder %s591_s15, 1 }
   0x9   : > { %p650_p4 = por %p787_p1, %p40_p0  ;;  %p119_p7 = scmp.lt.s32.totalorder %s591_s15, 3 }
   0xa   : > { %p655_p6 = por %p112_p3, %p40_p0  ;;  %s593_s21 = smov [#allocation5]  }
   0xb   : > { %s791_s18 = scalar_select %p650_p4, 1, 0 }
   0xc   : > { %s792_s19 = scalar_select %p655_p6, 1, 0 }
   0xd   : > { %p660_p8 = pnand %p383_p5, %p119_p7  ;;  %s131_s22 = sshll.u32 %s593_s21, 4  ;;  %s132_s22 = int_to_ptr.vmem [resolvable:$true] %s131_s22 }
   0xe   : > { %s674_s24 = sadd.s32 1, %s591_s15   ;;  %s27_s25 = sadd.s32 1, %s587_s14 }
   0xf   : > { %s793_s20 = scalar_select %p660_p8, 1, 0 }
  0x10   : > { %p416_p9 = pneg %p660_p8  ;;  %s24_s26 = ssub.s32 %s591_s15, %s674_s24 }
  0x11   : > { %s480_s27 = scalar_lea.vmem %s132_s22, 256  ;;  %p488_p5 = scmp.lt.s32.totalorder %s132_s22, %s132_s22 }
  0x12   : > { %p669_p11 = pnand %p416_p9, %p787_p1  ;;  %p481_p13 = scmp.ne.s32.totalorder %s132_s22, %s480_s27 }
  0x13   : > { %p489_p7 = scmp.lt.s32.totalorder %s480_s27, %s480_s27 }
  0x14   : > { %p471_p12 = pneg %p669_p11 }
  0x15   : > { %p490_p10 = por %p489_p7, %p488_p5 }
  0x16   : > { %p483_p0 = pnand %p481_p13, %p471_p12 }
  0x18   : > { %p484_p3 = pneg %p483_p0 }
  0x1a   : > { %p491_p2 = pnand %p490_p10, %p484_p3 }
  0x1c   : > { %494 = shalt.err (!%p491_p2)
}
  0x1d   : > { %s594_s28 = smov 128   ;;  %s595_s29 = smov 8  }
  0x1e   : > { %419 = dma.hbm_to_vmem [thread:$0]  (!%p669_p11), %s784_s1, 256, %s132_s22, [#allocation6], %s594_s28, %s594_s28, %s595_s29  }
  0x1f   : > { %p25_p9 = scmp.eq.s32.totalorder %s24_s26, 0  ;;  %p34_p12 = scmp.ne.s32.totalorder %s587_s14, %s583_s13 }
  0x20   : > { %p35_p10 = scmp.eq.s32.totalorder %s591_s15, 0  ;;  %p429_p2 = scmp.lt.s32.totalorder %s591_s15, 2 }
  0x21   : > { %s691_s5 = scalar_select %p25_p9, %s587_s14, %s27_s25  }
  0x22   : > { %p36_p13 = por %p35_p10, %p34_p12  ;;  %p795_p0 = scmp.eq.s32.totalorder %s641_s16, 1 }
  0x23   : > { %s148_s7 = sand.u32 1, %s587_s14   ;;  %s387_s8 = sshll.u32 %s591_s15, 7 }
  0x24   : > { %p695_p3 = por %p795_p0, %p34_p12  ;;  %s386_s9 = sshll.u32 %s148_s7, 3 }
  0x25   : > { %s704_s17 = scalar_lea.hbm %s783_s0, %s387_s8  ;;  %s152_s21 = scalar_lea.vmem [#allocation2], %s386_s9 }
  0x26   : > { %s796_s6 = scalar_select %p695_p3, 1, 0 }
  0x27   : > { %s159_s22 = sshll.u32 %s152_s21, 4  ;;  %p706_p11 = pnand %p429_p2, %p36_p13  ;;  %s160_s22 = int_to_ptr.vmem [resolvable:$true] %s159_s22 }
  0x28   : > { %s149_s25 = scalar_lea.sflag [#allocation3], %s148_s7  ;;  %s495_s26 = scalar_lea.hbm %s704_s17, 128 }
  0x29   : > { %p496_p5 = scmp.ne.s32.totalorder %s704_s17, %s495_s26  ;;  %p497_p7 = pneg %p706_p11 }
  0x2a   : > { %s500_s29 = scalar_lea.hbm %s783_s0, 256  ;;  %p501_p10 = scmp.lt.s32.totalorder %s704_s17, %s783_s0 }
  0x2b   : > { %p498_p9 = pnand %p497_p7, %p496_p5  ;;  %p502_p2 = scmp.lt.s32.totalorder %s500_s29, %s495_s26 }
  0x2d   : > { %p499_p12 = pneg %p498_p9  ;;  %p503_p13 = por %p502_p2, %p501_p10 }
  0x2f   : > { %p504_p0 = pnand %p503_p13, %p499_p12 }
  0x31   : > { %507 = shalt.err (!%p504_p0)
}
  0x32   : > { %s508_s8 = scalar_lea.vmem %s160_s22, 128  ;;  %s596_s7 = smov [#allocation2]  }
  0x33   : > { %p509_p1 = scmp.ne.s32.totalorder %s160_s22, %s508_s8  ;;  %s513_s9 = sshll.u32 %s596_s7, 4  ;;  %s514_s9 = int_to_ptr.vmem [resolvable:$false] %s513_s9 }
  0x34   : > { %s515_s10 = scalar_lea.vmem %s514_s9, 256  ;;  %p516_p5 = scmp.lt.s32.totalorder %s160_s22, %s514_s9 }
  0x35   : > { %p511_p6 = pnand %p509_p1, %p497_p7  ;;  %p517_p9 = scmp.lt.s32.totalorder %s515_s10, %s508_s8 }
  0x37   : > { %p512_p3 = pneg %p511_p6  ;;  %p518_p4 = por %p517_p9, %p516_p5 }
  0x39   : > { %p519_p8 = pnand %p518_p4, %p512_p3 }
  0x3b   : > { %522 = shalt.err (!%p519_p8)
}
  0x3c   : > { %423 = dma.hbm_to_vmem [thread:$0]  (!%p706_p11), %s704_s17, 128, %s160_s22, %s149_s25  }
  0x3d   : > { %p798_p12 = scmp.ne.s32.totalorder %s793_s20, 0 }
  0x3e   : > { %s727_s11 = sand.u32 (!%p798_p12), 1, %s583_s13   ;;  %p799_p1 = scmp.ne.s32.totalorder (!%p798_p12), %s791_s18, 0 }
  0x3f   : > { %168 = sbr.rel (%p798_p12) target bundleno = 285 (0x11d), region = 32  ;;  %s389_s21 = sshll.u32 (!%p798_p12), %s727_s11, 3 }
  0x40   : > { %s171_s26 = scalar_lea.sflag (!%p798_p12), [#allocation3], %s727_s11  ;;  %s174_s27 = scalar_lea.vmem (!%p798_p12), [#allocation2], %s389_s21 }
  0x44   : > { %566 = dma.done.wait (%p799_p1), %s171_s26, 128  }
  0x45   : > { %568 = vsyncadd (%p799_p1), %s171_s26, 4294967168  ;;  %p800_p4 = scmp.eq.s32.totalorder %s641_s16, 0 }
  0x47   : > { %570 = dma.done.wait (%p800_p4), [#allocation6], 256   ;;  %p801_p6 = pmov %p800_p4 }
  0x48   : > { %v597_v0 = vmov 0.0   ;;  %vm598_vm0 = vmmov 0   ;;  %v203_v1 = vld [vmem:[#allocation5 + $0x8] sm:$0xff]  ;;  %v202_v2 = vld [vmem:[#allocation5] sm:$0xff]  ;;  %v201_v3 = vld [vmem:[%s174_s27] sm:$0xff]  ;;  %vm204_vm1 = vcmask 130048  }
  0x49   : > { %572 = vsyncadd (%p801_p6), [#allocation6], 4294967040  ;;  %401 = vmatprep.subr.mxu0 %v597_v0  ;;  %405 = vmatprep.mubr.msk.f32.mxu0 %vm598_vm0, %v597_v0  ;;  %v393_v4 = vld [vmem:[%s785_s2] ss:$0 sm:$0xff]  ;;  %s395_s17 = sshll.u32 %s641_s16, 7  ;;  %s200_s22 = scalar_lea.vmem [#allocation7], %s389_s21 }
  0x4a   : > { %402 = vmatpush3.msra.mxu0 %v203_v1  ;;  %s302_s23 = sshll.u32 %s200_s22, 4  ;;  %vm286_vm2 = vcmask 261120   ;;  %s746_s29 = scalar_lea.hbm %s786_s3, %s395_s17  ;;  %s303_s23 = int_to_ptr.vmem [resolvable:$true] %s302_s23 }
  0x4b   : > { %403 = vmatprep.subr.mxu0 %v597_v0  ;;  %s289_s30 = scalar_lea.sflag [#allocation4], %s727_s11  ;;  %s523_s4 = scalar_lea.vmem %s303_s23, 128 }
  0x4c   : > { %404 = vmatpush3.msra.mxu0 %v202_v2  ;;  %p524_p8 = scmp.ne.s32.totalorder %s303_s23, %s523_s4  ;;  %p802_p3 = scmp.ne.s32.totalorder %s796_s6, 0 }
  0x4d   : > { %406 = vmatmul.mubr.msk.f32.vlgmr.msra.gmra.mxu0 %vm204_vm1, %v201_v3  ;;  %s599_s16 = smov [#allocation7]  }
  0x4e   : > { %p525_p11 = pnand %p524_p8, %p802_p3  ;;  %s527_s8 = sshll.u32 %s599_s16, 4  ;;  %s528_s8 = int_to_ptr.vmem [resolvable:$false] %s527_s8 }
  0x4f   : > { %s529_s7 = scalar_lea.vmem %s528_s8, 256  ;;  %p530_p10 = scmp.lt.s32.totalorder %s303_s23, %s528_s8 }
  0x50   : > { %p526_p7 = pneg %p525_p11  ;;  %p531_p2 = scmp.lt.s32.totalorder %s529_s7, %s523_s4 }
  0x52   : > { %p532_p13 = por %p531_p2, %p530_p10 }
  0x54   : > { %p533_p0 = pnand %p532_p13, %p526_p7 }
 0x10d   : > { %v274_v5 = vpop.f32.mrf.mxu0 }
 0x10e   : > { %v285_v6 = vsub.f32 %v274_v5, %v393_v4 }
 0x10f   : > { %v407_v7 = vpop.f32.mrf.mxu0 }
 0x110   : > { %287 = vst.msk [vmem:[%s200_s22] sm:$0xff] %vm286_vm2, %v285_v6 }
 0x111   : > { %536 = shalt.err (!%p533_p0)
}
 0x112   : > { %s537_s9 = scalar_lea.hbm %s746_s29, 128  ;;  %s541_s21 = scalar_lea.hbm %s786_s3, 256 }
 0x113   : > { %p538_p5 = scmp.ne.s32.totalorder %s746_s29, %s537_s9  ;;  %p542_p1 = scmp.lt.s32.totalorder %s746_s29, %s786_s3 }
 0x114   : > { %p543_p4 = scmp.lt.s32.totalorder %s541_s21, %s537_s9 }
 0x115   : > { %p539_p9 = pnand %p538_p5, %p802_p3 }
 0x116   : > { %p544_p6 = por %p543_p4, %p542_p1 }
 0x117   : > { %p540_p12 = pneg %p539_p9 }
 0x119   : > { %p545_p8 = pnand %p544_p6, %p540_p12 }
 0x11b   : > { %548 = shalt.err (!%p545_p8)
}
 0x11c   : > { %414 = dma.vmem_to_hbm [thread:$0]  (%p802_p3), %s303_s23, 128, %s746_s29, %s289_s30  }
 0x11d PF: > { %s314_s18 = sand.u32 1, %s579_s12   ;;  %p803_p11 = scmp.ne.s32.totalorder %s792_s19, 0 }
 0x11e   : > { %p804_p7 = scmp.ge.s32.totalorder %s591_s15, 2  ;;  %s315_s20 = scalar_lea.sflag [#allocation4], %s314_s18 }
 0x120   : > { %p425_p10 = pnand %p804_p7, %p803_p11 }
 0x122   : > { %p426_p2 = pneg %p425_p10 }
 0x124   : > { %574 = dma.done.wait (%p426_p2), %s315_s20, 128  }
 0x125   : > { %576 = vsyncadd (%p426_p2), %s315_s20, 4294967168  ;;  %p17_p13 = scmp.ge.s32.totalorder %s674_s24, 4   ;;  %s805_s12 = smov %s583_s13 }
 0x126   : > { %s806_s13 = smov %s587_s14  ;;  %s807_s14 = smov %s691_s5 }
 0x127   : > { %s808_s15 = smov %s674_s24  ;;  %19 = sbr.rel (!%p17_p13) target bundleno = 6 (0x6), region = 81 }
 0x12c   :  { %320 = vsyncpa [#allocation3], 1 }
 0x12d   :  { %322 = vsyncpa [#allocation3 + $0x1], 1 }
 0x12e   :  { %323 = vsyncpa [#allocation6], 1 }
 0x12f   :  { %324 = vsyncpa [#allocation4], 1 }
 0x130   :  { %326 = vsyncpa [#allocation4 + $0x1], 1 }

</bundles_post_ra>
